<compile_context>
chip_gen: v6e
topology: v6e:2x2x1
jax: 0.10.0
libtpu: 0.0.40
codegen_flags: <defaults>
</compile_context>

<pallas_src>
import math
import jax
import jax.numpy as jnp
from jax.experimental import pallas as pl
from jax.experimental.pallas import tpu as pltpu

# ---- model config (small, deterministic) -------------------------------------------------
B = 2          # batch
S = 8          # sequence length
H = 32         # hidden size
NH = 4         # num attention heads
HD = H // NH   # attention head size
LN_EPS = 1e-12
SCALE = 1.0 / math.sqrt(HD)

# TODO(synk): dropout (attention_probs_dropout_prob / hidden_dropout_prob) is identity in eval
#             mode and omitted; output_attentions=False so only the attention output is returned.
# TODO(synk): at real BERT shapes (S=512, H=768) add a query-tile grid axis with online softmax,
#             keep K/V in double-buffered VMEM tiles sized for the chip (64 MiB on v7x,
#             128 MiB on v5e/v6e) and set vmem_limit_bytes explicitly.


def bert_attention_kernel(hs_ref, kmask_ref, wqkv_ref, wo_ref, consts_ref, out_ref):
    x = hs_ref[0]                                     # (S, H) f32 — this batch element
    kmask = kmask_ref[0]                              # (1, S) f32 additive key-padding mask

    bqkv  = consts_ref[0:1, :]                        # (1, 3H)  [bq*scale | bk | bv]
    bo    = consts_ref[1:2, 0:H]                      # (1, H)
    gamma = consts_ref[2:3, 0:H]                      # (1, H)
    beta  = consts_ref[3:4, 0:H]                      # (1, H)

    # ---- fused Q/K/V projection: ONE 2-D matmul, K=H, N=3H (bf16 operands, f32 accum) ----
    qkv = jnp.dot(x.astype(jnp.bfloat16), wqkv_ref[...],
                  preferred_element_type=jnp.float32) + bqkv           # (S, 3H) f32
    qkv_b = qkv.astype(jnp.bfloat16)

    # Split into heads only for the per-head score/context matmuls (leading-batch einsums).
    # TODO(synk): at real hidden sizes (H >= 128) these HD-wide lane slices sit on 128-aligned
    #             offsets; at the toy H=32 they are tiny masked copies.
    def heads(col0):                                  # -> (NH, S, HD) bf16
        return jnp.stack(
            [qkv_b[:, col0 + n * HD: col0 + (n + 1) * HD] for n in range(NH)], axis=0)

    q = heads(0)            # pre-scaled by 1/sqrt(HD) via the packed weights/bias
    k = heads(H)
    v = heads(2 * H)

    # ---- scores + numerically-stable softmax (all f32) ----
    scores = jnp.einsum('nqd,nkd->nqk', q, k,
                        preferred_element_type=jnp.float32)            # (NH, S, S)
    scores = scores + kmask[None]                    # (1,1,S) key mask broadcast over heads/queries
    m = jnp.max(scores, axis=-1, keepdims=True)
    e = jnp.exp(scores - m)
    denom = jnp.sum(e, axis=-1, keepdims=True)
    inv = pl.reciprocal(denom, approx=True)          # EUP slot
    inv = inv * (2.0 - denom * inv)                  # one Newton step -> near-exact reciprocal
    probs = e * inv

    # ---- context, merge heads, output projection: ONE 2-D matmul with K = NH*HD = H ----
    ctx = jnp.einsum('nqk,nkd->nqd', probs.astype(jnp.bfloat16), v,
                     preferred_element_type=jnp.float32)               # (NH, S, HD)
    ctx_b = ctx.astype(jnp.bfloat16)
    ctx2d = jnp.concatenate([ctx_b[n] for n in range(NH)], axis=-1)    # (S, H) merge-heads order
    dense = jnp.dot(ctx2d, wo_ref[...],
                    preferred_element_type=jnp.float32) + bo           # (S, H) f32

    # ---- residual + LayerNorm (f32, biased variance -> matches torch.nn.LayerNorm) ----
    y = dense + x
    mu = jnp.mean(y, axis=-1, keepdims=True)
    var = jnp.mean((y - mu) ** 2, axis=-1, keepdims=True)
    y = (y - mu) * jax.lax.rsqrt(var + LN_EPS) * gamma + beta

    # TODO(synk): H=32 (<128 lanes) keeps this a lane-masked store; real hidden sizes are lane-dense.
    out_ref[0] = y.astype(out_ref.dtype)


def bert_attention(hidden_states, attention_mask, params):
    """hidden_states: (B, S, H) f32.
    attention_mask: additive key-padding mask (B, 1, 1, S), 0 = attend / -10000 = masked (HF style)."""
    (wq, bq, wk, bk, wv, bv, wo, bo, gamma, beta) = params

    # ONE packed QKV weight (H, 3H): [Wq^T * scale | Wk^T | Wv^T], bf16 for the MXU.
    wqkv = jnp.concatenate([wq.T * SCALE, wk.T, wv.T], axis=1).astype(jnp.bfloat16)   # (H, 3H)
    woT = wo.T.astype(jnp.bfloat16)                                                   # (H, H)

    # All small 1-D constants in one f32 array: row0 = packed qkv bias, rows 1-3 = bo/gamma/beta.
    consts = jnp.zeros((4, 3 * H), jnp.float32)
    consts = consts.at[0].set(jnp.concatenate([bq * SCALE, bk, bv]))
    consts = consts.at[1, :H].set(bo).at[2, :H].set(gamma).at[3, :H].set(beta)

    key_mask = attention_mask.reshape(B, 1, S).astype(jnp.float32)    # per-batch additive key mask

    grid_spec = pltpu.PrefetchScalarGridSpec(
        num_scalar_prefetch=0,
        grid=(B,),
        in_specs=[pl.BlockSpec((1, S, H), lambda b: (b, 0, 0)),       # hidden states (this batch)
                  pl.BlockSpec((1, 1, S), lambda b: (b, 0, 0)),       # key mask (this batch)
                  pl.BlockSpec((H, 3 * H), lambda b: (0, 0)),         # packed QKV weight
                  pl.BlockSpec((H, H), lambda b: (0, 0)),             # output projection weight
                  pl.BlockSpec((4, 3 * H), lambda b: (0, 0))],        # packed small constants
        out_specs=pl.BlockSpec((1, S, H), lambda b: (b, 0, 0)),
    )
    out = pl.pallas_call(
        bert_attention_kernel,
        out_shape=jax.ShapeDtypeStruct((B, S, H), jnp.float32),
        grid_spec=grid_spec,
        compiler_params=pltpu.CompilerParams(dimension_semantics=("parallel",)),
    )(hidden_states, key_mask, wqkv, woT, consts)
    return out


def bert_attention_ref(hidden_states, attention_mask, params):
    """Pure-JAX f32 reference mirroring the PyTorch forward (eval mode)."""
    (wq, bq, wk, bk, wv, bv, wo, bo, gamma, beta) = params

    def to_heads(x):  # (B,S,H) -> (B,NH,S,HD)
        return x.reshape(B, S, NH, HD).transpose(0, 2, 1, 3)

    q = to_heads(hidden_states @ wq.T + bq)
    k = to_heads(hidden_states @ wk.T + bk)
    v = to_heads(hidden_states @ wv.T + bv)
    scores = jnp.einsum('bhqd,bhkd->bhqk', q, k) * SCALE + attention_mask  # (B,1,1,S) broadcasts
    probs = jax.nn.softmax(scores, axis=-1)
    ctx = jnp.einsum('bhqk,bhkd->bhqd', probs, v).transpose(0, 2, 1, 3).reshape(B, S, H)
    x = ctx @ wo.T + bo + hidden_states
    mu = jnp.mean(x, axis=-1, keepdims=True)
    var = jnp.mean((x - mu) ** 2, axis=-1, keepdims=True)
    return (x - mu) / jnp.sqrt(var + LN_EPS) * gamma + beta


if __name__ == "__main__":
    key = jax.random.PRNGKey(0)
    keys = jax.random.split(key, 6)

    hidden_states = jax.random.normal(keys[0], (B, S, H), dtype=jnp.float32)

    # Additive key-padding mask (HF convention): mask the last two key positions of batch 1.
    pad = jnp.zeros((B, S), dtype=jnp.float32).at[1, -2:].set(1.0)
    attention_mask = (pad * -10000.0)[:, None, None, :]        # (B, 1, 1, S)

    def linear_init(k, out_dim, in_dim):
        bound = 1.0 / math.sqrt(in_dim)
        kw, kb = jax.random.split(k)
        w = jax.random.uniform(kw, (out_dim, in_dim), jnp.float32, -bound, bound)
        b = jax.random.uniform(kb, (out_dim,), jnp.float32, -bound, bound)
        return w, b

    wq, bq = linear_init(keys[1], H, H)
    wk, bk = linear_init(keys[2], H, H)
    wv, bv = linear_init(keys[3], H, H)
    wo, bo = linear_init(keys[4], H, H)
    gamma = jnp.ones((H,), jnp.float32)
    beta = jnp.zeros((H,), jnp.float32)
    params = (wq, bq, wk, bk, wv, bv, wo, bo, gamma, beta)

    out = bert_attention(hidden_states, attention_mask, params)
    out = jax.block_until_ready(out)

    ref = bert_attention_ref(hidden_states, attention_mask, params)
    assert out.shape == (B, S, H)
    # bf16 MXU operands (f32 accumulation) vs. the f32 reference -> ~1e-2-level agreement expected.
    assert jnp.allclose(out, ref, atol=3e-2, rtol=3e-2), "mismatch vs reference"

    print("KERNEL_OK")
</pallas_src>

<mosaic_0001>
module attributes {stable_mosaic.version = 11 : i64} {
  func.func @bert_attention_kernel(%arg0: i32, %arg1: memref<1x8x32xf32, #tpu.memory_space<vmem>>, %arg2: memref<1x1x8xf32, #tpu.memory_space<vmem>>, %arg3: memref<32x96xbf16, #tpu.memory_space<vmem>>, %arg4: memref<32x32xbf16, #tpu.memory_space<vmem>>, %arg5: memref<4x96xf32, #tpu.memory_space<vmem>>, %arg6: memref<1x8x32xf32, #tpu.memory_space<vmem>>) attributes {dimension_semantics = [#tpu.dimension_semantics<parallel>], iteration_bounds = array<i64: 2>, scalar_prefetch = 0 : i64, scratch_operands = 0 : i64, tpu.core_type = #tpu.core_type<tc>, window_params = [{transform_indices = @transform_0, window_bounds = array<i64: 1, 8, 32>}, {transform_indices = @transform_1, window_bounds = array<i64: 1, 1, 8>}, {pipeline_mode = #tpu.pipeline_mode<synchronous>, transform_indices = @transform_2, window_bounds = array<i64: 32, 96>}, {pipeline_mode = #tpu.pipeline_mode<synchronous>, transform_indices = @transform_3, window_bounds = array<i64: 32, 32>}, {pipeline_mode = #tpu.pipeline_mode<synchronous>, transform_indices = @transform_4, window_bounds = array<i64: 4, 96>}, {transform_indices = @transform_5, window_bounds = array<i64: 1, 8, 32>}]} {
    %c0 = arith.constant 0 : index
    %c0_0 = arith.constant 0 : index
    %c0_1 = arith.constant 0 : index
    %0 = vector.load %arg1[%c0, %c0_0, %c0_1] : memref<1x8x32xf32, #tpu.memory_space<vmem>>, vector<1x8x32xf32>
    %1 = vector.shape_cast %0 : vector<1x8x32xf32> to vector<8x32xf32>
    %c0_2 = arith.constant 0 : index
    %c0_3 = arith.constant 0 : index
    %c0_4 = arith.constant 0 : index
    %2 = vector.load %arg2[%c0_2, %c0_3, %c0_4] : memref<1x1x8xf32, #tpu.memory_space<vmem>>, vector<1x1x8xf32>
    %3 = vector.shape_cast %2 : vector<1x1x8xf32> to vector<1x8xf32>
    %c0_5 = arith.constant 0 : index
    %c0_6 = arith.constant 0 : index
    %4 = vector.load %arg5[%c0_5, %c0_6] : memref<4x96xf32, #tpu.memory_space<vmem>>, vector<1x96xf32>
    %c1 = arith.constant 1 : index
    %c0_7 = arith.constant 0 : index
    %5 = vector.load %arg5[%c1, %c0_7] : memref<4x96xf32, #tpu.memory_space<vmem>>, vector<1x32xf32>
    %c2 = arith.constant 2 : index
    %c0_8 = arith.constant 0 : index
    %6 = vector.load %arg5[%c2, %c0_8] : memref<4x96xf32, #tpu.memory_space<vmem>>, vector<1x32xf32>
    %c3 = arith.constant 3 : index
    %c0_9 = arith.constant 0 : index
    %7 = vector.load %arg5[%c3, %c0_9] : memref<4x96xf32, #tpu.memory_space<vmem>>, vector<1x32xf32>
    %8 = arith.truncf %1 : vector<8x32xf32> to vector<8x32xbf16>
    %c0_10 = arith.constant 0 : index
    %c0_11 = arith.constant 0 : index
    %9 = vector.load %arg3[%c0_10, %c0_11] : memref<32x96xbf16, #tpu.memory_space<vmem>>, vector<32x96xbf16>
    %cst = arith.constant dense<0.000000e+00> : vector<8x96xf32>
    %10 = tpu.matmul %8, %9, %cst {dimension_numbers = #tpu.dot_dimension_numbers<[1], [0], [0], [1], [0, 0, 1, 1], [], []>} : vector<8x32xbf16>, vector<32x96xbf16>, vector<8x96xf32> -> vector<8x96xf32>
    %11 = vector.broadcast %4 : vector<1x96xf32> to vector<8x96xf32>
    %12 = arith.addf %10, %11 : vector<8x96xf32>
    %13 = arith.truncf %12 : vector<8x96xf32> to vector<8x96xbf16>
    %14 = vector.extract_strided_slice %13 {offsets = [0, 0], sizes = [8, 8], strides = [1, 1]} : vector<8x96xbf16> to vector<8x8xbf16>
    %15 = vector.extract_strided_slice %13 {offsets = [0, 8], sizes = [8, 8], strides = [1, 1]} : vector<8x96xbf16> to vector<8x8xbf16>
    %16 = vector.extract_strided_slice %13 {offsets = [0, 16], sizes = [8, 8], strides = [1, 1]} : vector<8x96xbf16> to vector<8x8xbf16>
    %17 = vector.extract_strided_slice %13 {offsets = [0, 24], sizes = [8, 8], strides = [1, 1]} : vector<8x96xbf16> to vector<8x8xbf16>
    %18 = vector.shape_cast %14 : vector<8x8xbf16> to vector<1x8x8xbf16>
    %19 = vector.shape_cast %15 : vector<8x8xbf16> to vector<1x8x8xbf16>
    %20 = vector.shape_cast %16 : vector<8x8xbf16> to vector<1x8x8xbf16>
    %21 = vector.shape_cast %17 : vector<8x8xbf16> to vector<1x8x8xbf16>
    %22 = tpu.concatenate %18, %19, %20, %21 in 0 : vector<1x8x8xbf16>, vector<1x8x8xbf16>, vector<1x8x8xbf16>, vector<1x8x8xbf16> -> vector<4x8x8xbf16>
    %23 = vector.extract_strided_slice %13 {offsets = [0, 32], sizes = [8, 8], strides = [1, 1]} : vector<8x96xbf16> to vector<8x8xbf16>
    %24 = vector.extract_strided_slice %13 {offsets = [0, 40], sizes = [8, 8], strides = [1, 1]} : vector<8x96xbf16> to vector<8x8xbf16>
    %25 = vector.extract_strided_slice %13 {offsets = [0, 48], sizes = [8, 8], strides = [1, 1]} : vector<8x96xbf16> to vector<8x8xbf16>
    %26 = vector.extract_strided_slice %13 {offsets = [0, 56], sizes = [8, 8], strides = [1, 1]} : vector<8x96xbf16> to vector<8x8xbf16>
    %27 = vector.shape_cast %23 : vector<8x8xbf16> to vector<1x8x8xbf16>
    %28 = vector.shape_cast %24 : vector<8x8xbf16> to vector<1x8x8xbf16>
    %29 = vector.shape_cast %25 : vector<8x8xbf16> to vector<1x8x8xbf16>
    %30 = vector.shape_cast %26 : vector<8x8xbf16> to vector<1x8x8xbf16>
    %31 = tpu.concatenate %27, %28, %29, %30 in 0 : vector<1x8x8xbf16>, vector<1x8x8xbf16>, vector<1x8x8xbf16>, vector<1x8x8xbf16> -> vector<4x8x8xbf16>
    %32 = vector.extract_strided_slice %13 {offsets = [0, 64], sizes = [8, 8], strides = [1, 1]} : vector<8x96xbf16> to vector<8x8xbf16>
    %33 = vector.extract_strided_slice %13 {offsets = [0, 72], sizes = [8, 8], strides = [1, 1]} : vector<8x96xbf16> to vector<8x8xbf16>
    %34 = vector.extract_strided_slice %13 {offsets = [0, 80], sizes = [8, 8], strides = [1, 1]} : vector<8x96xbf16> to vector<8x8xbf16>
    %35 = vector.extract_strided_slice %13 {offsets = [0, 88], sizes = [8, 8], strides = [1, 1]} : vector<8x96xbf16> to vector<8x8xbf16>
    %36 = vector.shape_cast %32 : vector<8x8xbf16> to vector<1x8x8xbf16>
    %37 = vector.shape_cast %33 : vector<8x8xbf16> to vector<1x8x8xbf16>
    %38 = vector.shape_cast %34 : vector<8x8xbf16> to vector<1x8x8xbf16>
    %39 = vector.shape_cast %35 : vector<8x8xbf16> to vector<1x8x8xbf16>
    %40 = tpu.concatenate %36, %37, %38, %39 in 0 : vector<1x8x8xbf16>, vector<1x8x8xbf16>, vector<1x8x8xbf16>, vector<1x8x8xbf16> -> vector<4x8x8xbf16>
    "tpu.trace_start"() <{level = 10 : i32, message = "nqd,nkd->nqk"}> : () -> ()
    %cst_12 = arith.constant dense<0.000000e+00> : vector<4x8x8xf32>
    %41 = tpu.matmul %22, %31, %cst_12 {dimension_numbers = #tpu.dot_dimension_numbers<[2], [2], [1], [1], [0, 0, 0, 1, 1, 1], [0], [0]>} : vector<4x8x8xbf16>, vector<4x8x8xbf16>, vector<4x8x8xf32> -> vector<4x8x8xf32>
    "tpu.trace_stop"() : () -> ()
    %42 = vector.shape_cast %3 : vector<1x8xf32> to vector<1x1x8xf32>
    %43 = vector.broadcast %42 : vector<1x1x8xf32> to vector<4x8x8xf32>
    %44 = arith.addf %41, %43 : vector<4x8x8xf32>
    %cst_13 = arith.constant dense<0xFF800000> : vector<4x8xf32>
    %45 = vector.multi_reduction <maximumf>, %44, %cst_13 [2] : vector<4x8x8xf32> to vector<4x8xf32>
    %46 = vector.shape_cast %45 : vector<4x8xf32> to vector<4x8x1xf32>
    %47 = vector.broadcast %46 : vector<4x8x1xf32> to vector<4x8x8xf32>
    %48 = arith.subf %44, %47 : vector<4x8x8xf32>
    %49 = math.exp %48 : vector<4x8x8xf32>
    %cst_14 = arith.constant dense<0.000000e+00> : vector<4x8xf32>
    %50 = vector.multi_reduction <add>, %49, %cst_14 [2] : vector<4x8x8xf32> to vector<4x8xf32>
    %51 = vector.shape_cast %50 : vector<4x8xf32> to vector<4x8x1xf32>
    %52 = tpu.reciprocal %51 {approx = true} : vector<4x8x1xf32> -> vector<4x8x1xf32>
    %53 = arith.mulf %51, %52 : vector<4x8x1xf32>
    %cst_15 = arith.constant 2.000000e+00 : f32
    %54 = vector.broadcast %cst_15 : f32 to vector<4x8x1xf32>
    %55 = arith.subf %54, %53 : vector<4x8x1xf32>
    %56 = arith.mulf %52, %55 : vector<4x8x1xf32>
    %57 = vector.broadcast %56 : vector<4x8x1xf32> to vector<4x8x8xf32>
    %58 = arith.mulf %49, %57 : vector<4x8x8xf32>
    %59 = arith.truncf %58 : vector<4x8x8xf32> to vector<4x8x8xbf16>
    "tpu.trace_start"() <{level = 10 : i32, message = "nqk,nkd->nqd"}> : () -> ()
    %cst_16 = arith.constant dense<0.000000e+00> : vector<4x8x8xf32>
    %60 = tpu.matmul %59, %40, %cst_16 {dimension_numbers = #tpu.dot_dimension_numbers<[2], [1], [1], [2], [0, 0, 0, 1, 1, 2], [0], [0]>} : vector<4x8x8xbf16>, vector<4x8x8xbf16>, vector<4x8x8xf32> -> vector<4x8x8xf32>
    "tpu.trace_stop"() : () -> ()
    %61 = arith.truncf %60 : vector<4x8x8xf32> to vector<4x8x8xbf16>
    %62 = vector.extract_strided_slice %61 {offsets = [0, 0, 0], sizes = [1, 8, 8], strides = [1, 1, 1]} : vector<4x8x8xbf16> to vector<1x8x8xbf16>
    %63 = vector.shape_cast %62 : vector<1x8x8xbf16> to vector<8x8xbf16>
    %64 = vector.extract_strided_slice %61 {offsets = [1, 0, 0], sizes = [1, 8, 8], strides = [1, 1, 1]} : vector<4x8x8xbf16> to vector<1x8x8xbf16>
    %65 = vector.shape_cast %64 : vector<1x8x8xbf16> to vector<8x8xbf16>
    %66 = vector.extract_strided_slice %61 {offsets = [2, 0, 0], sizes = [1, 8, 8], strides = [1, 1, 1]} : vector<4x8x8xbf16> to vector<1x8x8xbf16>
    %67 = vector.shape_cast %66 : vector<1x8x8xbf16> to vector<8x8xbf16>
    %68 = vector.extract_strided_slice %61 {offsets = [3, 0, 0], sizes = [1, 8, 8], strides = [1, 1, 1]} : vector<4x8x8xbf16> to vector<1x8x8xbf16>
    %69 = vector.shape_cast %68 : vector<1x8x8xbf16> to vector<8x8xbf16>
    %70 = tpu.concatenate %63, %65, %67, %69 in 1 : vector<8x8xbf16>, vector<8x8xbf16>, vector<8x8xbf16>, vector<8x8xbf16> -> vector<8x32xbf16>
    %c0_17 = arith.constant 0 : index
    %c0_18 = arith.constant 0 : index
    %71 = vector.load %arg4[%c0_17, %c0_18] : memref<32x32xbf16, #tpu.memory_space<vmem>>, vector<32x32xbf16>
    %cst_19 = arith.constant dense<0.000000e+00> : vector<8x32xf32>
    %72 = tpu.matmul %70, %71, %cst_19 {dimension_numbers = #tpu.dot_dimension_numbers<[1], [0], [0], [1], [0, 0, 1, 1], [], []>} : vector<8x32xbf16>, vector<32x32xbf16>, vector<8x32xf32> -> vector<8x32xf32>
    %73 = vector.broadcast %5 : vector<1x32xf32> to vector<8x32xf32>
    %74 = arith.addf %72, %73 : vector<8x32xf32>
    %75 = arith.addf %74, %1 : vector<8x32xf32>
    %cst_20 = arith.constant dense<0.000000e+00> : vector<8xf32>
    %76 = vector.multi_reduction <add>, %75, %cst_20 [1] : vector<8x32xf32> to vector<8xf32>
    %77 = vector.shape_cast %76 : vector<8xf32> to vector<8x1xf32>
    %cst_21 = arith.constant 3.200000e+01 : f32
    %78 = vector.broadcast %cst_21 : f32 to vector<8x1xf32>
    %79 = arith.divf %77, %78 : vector<8x1xf32>
    %80 = vector.broadcast %79 : vector<8x1xf32> to vector<8x32xf32>
    %81 = arith.subf %75, %80 : vector<8x32xf32>
    %82 = arith.mulf %81, %81 : vector<8x32xf32>
    %cst_22 = arith.constant dense<0.000000e+00> : vector<8xf32>
    %83 = vector.multi_reduction <add>, %82, %cst_22 [1] : vector<8x32xf32> to vector<8xf32>
    %84 = vector.shape_cast %83 : vector<8xf32> to vector<8x1xf32>
    %cst_23 = arith.constant 3.200000e+01 : f32
    %85 = vector.broadcast %cst_23 : f32 to vector<8x1xf32>
    %86 = arith.divf %84, %85 : vector<8x1xf32>
    %87 = vector.broadcast %79 : vector<8x1xf32> to vector<8x32xf32>
    %88 = arith.subf %75, %87 : vector<8x32xf32>
    %cst_24 = arith.constant 9.99999996E-13 : f32
    %89 = vector.broadcast %cst_24 : f32 to vector<8x1xf32>
    %90 = arith.addf %86, %89 : vector<8x1xf32>
    %91 = math.rsqrt %90 : vector<8x1xf32>
    %92 = vector.broadcast %91 : vector<8x1xf32> to vector<8x32xf32>
    %93 = arith.mulf %88, %92 : vector<8x32xf32>
    %94 = vector.broadcast %6 : vector<1x32xf32> to vector<8x32xf32>
    %95 = arith.mulf %93, %94 : vector<8x32xf32>
    %96 = vector.broadcast %7 : vector<1x32xf32> to vector<8x32xf32>
    %97 = arith.addf %95, %96 : vector<8x32xf32>
    %c0_25 = arith.constant 0 : index
    %c0_26 = arith.constant 0 : index
    %c0_27 = arith.constant 0 : index
    %98 = vector.load %arg6[%c0_25, %c0_26, %c0_27] : memref<1x8x32xf32, #tpu.memory_space<vmem>>, vector<1x8x32xf32>
    %99 = vector.shape_cast %98 : vector<1x8x32xf32> to vector<8x32xf32>
    %100 = vector.shape_cast %97 : vector<8x32xf32> to vector<1x8x32xf32>
    tpu.vector_store %arg6[%c0_25, %c0_26, %c0_27], %100 {strides = array<i32>} : memref<1x8x32xf32, #tpu.memory_space<vmem>>, vector<1x8x32xf32>,
    return
  }
  func.func @transform_0(%arg0: i32) -> (i32, i32, i32) {
    %c0_i32 = arith.constant 0 : i32
    %c0_i32_0 = arith.constant 0 : i32
    %c0_i32_1 = arith.constant 0 : i32
    return %arg0, %c0_i32, %c0_i32_0 : i32, i32, i32
  }
  func.func @transform_1(%arg0: i32) -> (i32, i32, i32) {
    %c0_i32 = arith.constant 0 : i32
    %c0_i32_0 = arith.constant 0 : i32
    %c0_i32_1 = arith.constant 0 : i32
    return %arg0, %c0_i32, %c0_i32_0 : i32, i32, i32
  }
  func.func @transform_2(%arg0: i32) -> (i32, i32) {
    %c0_i32 = arith.constant 0 : i32
    %c0_i32_0 = arith.constant 0 : i32
    %c0_i32_1 = arith.constant 0 : i32
    return %c0_i32, %c0_i32_0 : i32, i32
  }
  func.func @transform_3(%arg0: i32) -> (i32, i32) {
    %c0_i32 = arith.constant 0 : i32
    %c0_i32_0 = arith.constant 0 : i32
    %c0_i32_1 = arith.constant 0 : i32
    return %c0_i32, %c0_i32_0 : i32, i32
  }
  func.func @transform_4(%arg0: i32) -> (i32, i32) {
    %c0_i32 = arith.constant 0 : i32
    %c0_i32_0 = arith.constant 0 : i32
    %c0_i32_1 = arith.constant 0 : i32
    return %c0_i32, %c0_i32_0 : i32, i32
  }
  func.func @transform_5(%arg0: i32) -> (i32, i32, i32) {
    %c0_i32 = arith.constant 0 : i32
    %c0_i32_0 = arith.constant 0 : i32
    %c0_i32_1 = arith.constant 0 : i32
    return %arg0, %c0_i32, %c0_i32_0 : i32, i32, i32
  }
}

</mosaic_0001>

<bundles_post_ra>
// kernel: tpu_custom_call.1
= control target key start
LH: loop header
LB: loop body
LE: loop exit
PB: predicated region body
PF: predicated region fallthrough
CT: control target
= control target key end

     0   :  { %s1850_s0 = inlined_call_operand.hbm [shape: f32[2,8,32], index: 0, kind: input, shape index: {}]   ;;  %s1851_s1 = inlined_call_operand.hbm [shape: f32[2,1,8], index: 1, kind: input, shape index: {}]   ;;  %s1852_s2 = inlined_call_operand.hbm [shape: bf16[32,96], index: 2, kind: input, shape index: {}]   ;;  %s1853_s3 = inlined_call_operand.hbm [shape: bf16[32,32], index: 3, kind: input, shape index: {}]   ;;  %s1854_s4 = inlined_call_operand.vmem [shape: f32[4,96], index: 4, kind: input, shape index: {}]   ;;  %s1855_s5 = inlined_call_operand.hbm [shape: f32[2,8,32], index: 5, kind: output, shape index: {}]  }
   0x1   :  { %1860 = sst [smem:[#allocation16_spill]] %s1850_s0 }
   0x2   :  { %1861 = sst [smem:[#allocation17_spill]] %s1852_s2 }
   0x3   :  { %10 = vsyncpa [#allocation3], 0 }
   0x4   :  { %12 = vsyncpa [#allocation3 + $0x1], 0 }
   0x5   :  { %13 = vsyncpa [#allocation6], 0 }
   0x6   :  { %15 = vsyncpa [#allocation6 + $0x1], 0 }
   0x7   :  { %16 = vsyncpa [#allocation9], 0 }
   0x8   :  { %17 = vsyncpa [#allocation4], 0 }
   0x9   :  { %19 = vsyncpa [#allocation4 + $0x1], 0  ;;  %s1529_s18 = smov 0   ;;  %s1531_s19 = smov 0  }
   0xa   :  { %s1533_s20 = smov 0   ;;  %s1535_s21 = smov 0  }
   0xb LB: > { %s1550_s22 = sadd.s32 4294967295, %s1480_s21   ;;  %s1068_s23 = sadd.s32 4294967294, %s1480_s21   ;;  %s1480_s21 = sphi %s1535_s21, %s1883_s21   ;;  %s1476_s20 = sphi %s1533_s20, %s1882_s20   ;;  %s1472_s19 = sphi %s1531_s19, %s1881_s19   ;;  %s1468_s18 = sphi %s1529_s18, %s1880_s18  }
   0xc   : > { %p45_p0 = scmp.ne.s32.totalorder %s1472_s19, %s1468_s18  ;;  %p1856_p1 = scmp.eq.s32.totalorder %s1550_s22, 0 }
   0xd   : > { %p164_p3 = scmp.eq.s32.totalorder %s1068_s23, 1  ;;  %p1069_p5 = scmp.ge.s32.totalorder %s1480_s21, 1 }
   0xe   : > { %p1559_p4 = por %p1856_p1, %p45_p0  ;;  %p171_p7 = scmp.lt.s32.totalorder %s1480_s21, 3 }
   0xf   : > { %p1564_p6 = por %p164_p3, %p45_p0  ;;  %s1482_s27 = smov [#allocation7]  }
  0x10   : > { %s1862_s24 = scalar_select %p1559_p4, 1, 0 }
  0x11   : > { %s1863_s25 = scalar_select %p1564_p6, 1, 0 }
  0x12   : > { %p1569_p8 = pnand %p1069_p5, %p171_p7  ;;  %s183_s28 = sshll.u32 %s1482_s27, 4  ;;  %s184_s28 = int_to_ptr.vmem [resolvable:$true] %s183_s28 }
  0x13   : > { %s1483_s30 = smov [#allocation8]   ;;  %s1307_s7 = scalar_lea.vmem %s184_s28, 256 }
  0x14   : > { %s1864_s26 = scalar_select %p1569_p8, 1, 0 }
  0x15   : > { %p1204_p9 = pneg %p1569_p8  ;;  %s196_s6 = sshll.u32 %s1483_s30, 4  ;;  %s197_s6 = int_to_ptr.vmem [resolvable:$true] %s196_s6 }
  0x16   : > { %p1308_p13 = scmp.ne.s32.totalorder %s184_s28, %s1307_s7  ;;  %p1315_p5 = scmp.lt.s32.totalorder %s184_s28, %s184_s28 }
  0x17   : > { %p1578_p11 = pnand %p1204_p9, %p1856_p1  ;;  %p1316_p7 = scmp.lt.s32.totalorder %s1307_s7, %s1307_s7 }
  0x19   : > { %p1298_p12 = pneg %p1578_p11  ;;  %p1317_p10 = por %p1316_p7, %p1315_p5 }
  0x1b   : > { %p1310_p0 = pnand %p1308_p13, %p1298_p12 }
  0x1d   : > { %p1311_p3 = pneg %p1310_p0 }
  0x1f   : > { %p1318_p9 = pnand %p1317_p10, %p1311_p3 }
  0x21   : > { %1321 = shalt.err (!%p1318_p9)
}
  0x22   : > { %s1484_s8 = smov 64   ;;  %s1485_s9 = smov 4  }
  0x23   : > { %s1866_s2 = sld [smem:[#allocation17_spill]]  ;;  %s1333_s12 = scalar_lea.vmem %s197_s6, 256 }
  0x24   : > { %p1334_p1 = scmp.ne.s32.totalorder %s197_s6, %s1333_s12  ;;  %p1341_p2 = scmp.lt.s32.totalorder %s197_s6, %s197_s6 }
  0x25   : > { %p1342_p6 = scmp.lt.s32.totalorder %s1333_s12, %s1333_s12 }
  0x26   : > { %p1336_p13 = pnand %p1334_p1, %p1298_p12 }
  0x27   : > { %p1343_p5 = por %p1342_p6, %p1341_p2 }
  0x28   : > { %p1337_p0 = pneg %p1336_p13 }
  0x29   : > { %1207 = dma.hbm_to_vmem [thread:$0]  (!%p1578_p11), %s1866_s2, 256, %s184_s28, [#allocation6], %s1484_s8, %s1484_s8, %s1485_s9  }
  0x2a   : > { %p1344_p10 = pnand %p1343_p5, %p1337_p0 }
  0x2c   : > { %1347 = shalt.err (!%p1344_p10)
}
  0x2d   : > { %1210 = dma.hbm_to_vmem [thread:$0]  (!%p1578_p11), %s1853_s3, 256, %s197_s6, [#allocation9], %s1484_s8, %s1484_s8, %s1485_s9  }
  0x2e   : > { %s1601_s15 = sadd.s32 1, %s1480_s21   ;;  %s32_s16 = sadd.s32 1, %s1476_s20 }
  0x2f   : > { %s29_s17 = ssub.s32 %s1480_s21, %s1601_s15  ;;  %p39_p1 = scmp.ne.s32.totalorder %s1476_s20, %s1472_s19 }
  0x30   : > { %p30_p2 = scmp.eq.s32.totalorder %s29_s17, 0  ;;  %p40_p6 = scmp.eq.s32.totalorder %s1480_s21, 0 }
  0x31   : > { %p1867_p12 = scmp.eq.s32.totalorder %s1550_s22, 1  ;;  %p1224_p7 = scmp.lt.s32.totalorder %s1480_s21, 2 }
  0x32   : > { %s1617_s27 = scalar_select %p30_p2, %s1476_s20, %s32_s16  }
  0x33   : > { %p1611_p3 = por %p1867_p12, %p39_p1  ;;  %p41_p9 = por %p40_p6, %p39_p1 }
  0x34   : > { %s1620_s28 = sand.u32 1, %s1476_s20   ;;  %s1074_s30 = sshll.u32 %s1480_s21, 7 }
  0x35   : > { %s1868_s23 = scalar_select %p1611_p3, 1, 0 }
  0x36   : > { %s1073_s29 = sshll.u32 %s1620_s28, 3  ;;  %s1869_s0 = sld [smem:[#allocation16_spill]] }
  0x37   : > { %s217_s9 = scalar_lea.vmem [#allocation2], %s1073_s29  ;;  %p1631_p11 = pnand %p1224_p7, %p41_p9 }
  0x38   : > { %s224_s10 = sshll.u32 %s217_s9, 4  ;;  %s231_s12 = sand.u32 1, %s1480_s21   ;;  %s1629_s10 = int_to_ptr.vmem [resolvable:$true] %s224_s10 }
  0x39   : > { %s214_s13 = scalar_lea.sflag [#allocation3], %s1620_s28  ;;  %p1350_p0 = pneg %p1631_p11 }
  0x3c   : > { %s1627_s8 = scalar_lea.hbm %s1869_s0, %s1074_s30  ;;  %s1353_s29 = scalar_lea.hbm %s1869_s0, 256 }
  0x3d   : > { %s1348_s14 = scalar_lea.hbm %s1627_s8, 128  ;;  %p1354_p1 = scmp.lt.s32.totalorder %s1627_s8, %s1869_s0 }
  0x3e   : > { %p1349_p13 = scmp.ne.s32.totalorder %s1627_s8, %s1348_s14  ;;  %p1355_p2 = scmp.lt.s32.totalorder %s1353_s29, %s1348_s14 }
  0x40   : > { %p1351_p5 = pnand %p1350_p0, %p1349_p13  ;;  %p1356_p6 = por %p1355_p2, %p1354_p1 }
  0x42   : > { %p1352_p10 = pneg %p1351_p5 }
  0x44   : > { %p1357_p12 = pnand %p1356_p6, %p1352_p10 }
  0x46   : > { %1360 = shalt.err (!%p1357_p12)
}
  0x47   : > { %s1361_s7 = scalar_lea.vmem %s1629_s10, 128  ;;  %s1486_s9 = smov [#allocation2]  }
  0x48   : > { %p1362_p7 = scmp.ne.s32.totalorder %s1629_s10, %s1361_s7  ;;  %s1366_s16 = sshll.u32 %s1486_s9, 4  ;;  %s1367_s16 = int_to_ptr.vmem [resolvable:$false] %s1366_s16 }
  0x49   : > { %s1368_s17 = scalar_lea.vmem %s1367_s16, 256  ;;  %p1369_p5 = scmp.lt.s32.totalorder %s1629_s10, %s1367_s16 }
  0x4a   : > { %p1364_p9 = pnand %p1362_p7, %p1350_p0  ;;  %p1370_p3 = scmp.lt.s32.totalorder %s1368_s17, %s1361_s7 }
  0x4c   : > { %p1365_p13 = pneg %p1364_p9  ;;  %p1371_p4 = por %p1370_p3, %p1369_p5 }
  0x4e   : > { %p1372_p1 = pnand %p1371_p4, %p1365_p13 }
  0x50   : > { %1375 = shalt.err (!%p1372_p1)
}
  0x51   : > { %1214 = dma.hbm_to_vmem [thread:$0]  (!%p1631_p11), %s1627_s8, 128, %s1629_s10, %s214_s13  }
  0x52   : > { %s1075_s14 = sshll.u32 %s1480_s21, 4  ;;  %s234_s29 = scalar_lea.vmem [#allocation5], %s1620_s28 }
  0x53   : > { %s241_s30 = sshll.u32 %s234_s29, 4  ;;  %s239_s16 = scalar_lea.hbm %s1851_s1, %s1075_s14  ;;  %s242_s30 = int_to_ptr.vmem [resolvable:$true] %s241_s30 }
  0x54   : > { %s232_s7 = scalar_lea.sflag [#allocation6], %s231_s12  ;;  %s1376_s17 = scalar_lea.hbm %s239_s16, 16 }
  0x55   : > { %p1377_p4 = scmp.ne.s32.totalorder %s239_s16, %s1376_s17  ;;  %s1381_s8 = scalar_lea.hbm %s1851_s1, 32 }
  0x56   : > { %p1382_p2 = scmp.lt.s32.totalorder %s239_s16, %s1851_s1  ;;  %p1383_p6 = scmp.lt.s32.totalorder %s1381_s8, %s1376_s17 }
  0x57   : > { %p1379_p3 = pnand %p1377_p4, %p1350_p0 }
  0x58   : > { %p1384_p12 = por %p1383_p6, %p1382_p2 }
  0x59   : > { %p1380_p10 = pneg %p1379_p3 }
  0x5b   : > { %p1385_p7 = pnand %p1384_p12, %p1380_p10 }
  0x5d   : > { %1388 = shalt.err (!%p1385_p7)
}
  0x5e   : > { %s1389_s13 = scalar_lea.vmem %s242_s30, 16  ;;  %s1487_s12 = smov [#allocation5]  }
  0x5f   : > { %p1390_p9 = scmp.ne.s32.totalorder %s242_s30, %s1389_s13  ;;  %s1394_s14 = sshll.u32 %s1487_s12, 4  ;;  %s1395_s14 = int_to_ptr.vmem [resolvable:$false] %s1394_s14 }
  0x60   : > { %s1396_s0 = scalar_lea.vmem %s1395_s14, 32  ;;  %p1397_p1 = scmp.lt.s32.totalorder %s242_s30, %s1395_s14 }
  0x61   : > { %p1392_p13 = pnand %p1390_p9, %p1350_p0  ;;  %p1398_p4 = scmp.lt.s32.totalorder %s1396_s0, %s1389_s13 }
  0x63   : > { %p1393_p5 = pneg %p1392_p13  ;;  %p1399_p3 = por %p1398_p4, %p1397_p1 }
  0x65   : > { %p1400_p8 = pnand %p1399_p3, %p1393_p5 }
  0x67   : > { %1403 = shalt.err (!%p1400_p8)
}
  0x68   : > { %1217 = dma.hbm_to_vmem [thread:$0]  (!%p1631_p11), %s239_s16, 16, %s242_s30, %s232_s7  }
  0x69   : > { %p1871_p10 = scmp.ne.s32.totalorder %s1864_s26, 0 }
  0x6a   : > { %s1685_s2 = sand.u32 (!%p1871_p10), 1, %s1472_s19   ;;  %p1872_p0 = scmp.ne.s32.totalorder (!%p1871_p10), %s1862_s24, 0 }
  0x6b   : > { %250 = sbr.rel (%p1871_p10) target bundleno = 1964 (0x7ac), region = 40  ;;  %s1077_s29 = sshll.u32 (!%p1871_p10), %s1685_s2, 3 }
  0x6c   : > { %s253_s6 = scalar_lea.sflag (!%p1871_p10), [#allocation3], %s1685_s2  ;;  %s256_s9 = scalar_lea.vmem (!%p1871_p10), [#allocation2], %s1077_s29 }
  0x70   : > { %1447 = dma.done.wait (%p1872_p0), %s253_s6, 128  }
  0x71   : > { %1449 = vsyncadd (%p1872_p0), %s253_s6, 4294967168  ;;  %s261_s26 = sand.u32 1, %s1550_s22   ;;  %s264_s30 = scalar_lea.vmem [#allocation5], %s1685_s2 }
  0x72   : > { %s262_s11 = scalar_lea.sflag [#allocation6], %s261_s26 }
  0x73   : > { %1451 = dma.done.wait (%p1872_p0), %s262_s11, 16  }
  0x74   : > { %1453 = vsyncadd (%p1872_p0), %s262_s11, 4294967280  ;;  %p1873_p8 = scmp.eq.s32.totalorder %s1550_s22, 0 }
  0x76   : > { %1455 = dma.done.wait (%p1873_p8), [#allocation6], 256   ;;  %p1874_p11 = pmov %p1873_p8 }
  0x77   : > { %p1875_p2 = pmov %p1873_p8 }
  0x78   : > { %1457 = vsyncadd (%p1874_p11), [#allocation6], 4294967040 }
  0x79   : > { %1459 = dma.done.wait (%p1875_p2), [#allocation9], 256   ;;  %p1876_p6 = pmov %p1875_p2 }
  0x7a   : > { %v1488_v0 = vmov 0.0   ;;  %vm1489_vm0 = vmmov 0   ;;  %v1274_v1 = vld [vmem:[#allocation7 + $0x8] sm:$0xff]   ;;  %v1275_v2 = vld [vmem:[#allocation7] sm:$0xff]   ;;  %vm331_vm1 = vcmask 261120   ;;  %s1490_s7 = smov 104  }
  0x7b   : > { %1461 = vsyncadd (%p1876_p6), [#allocation9], 4294967040  ;;  %1126 = vmatprep.subr.bf16.mxu0 %v1488_v0  ;;  %1130 = vmatprep.mubr.msk.bf16.mxu0 %vm1489_vm0, %v1488_v0  ;;  %v1715_v3 = vld [vmem:[%s256_s9] sm:$0xff]  ;;  %s1491_s17 = smov 120   ;;  %s1492_s8 = smov 96   ;;  %vm391_vm2 = vcmask 64512  }
  0x7c   : > { %1134 = vmatprep.subr.bf16.mxu1 %v1488_v0  ;;  %1136 = vmatprep.mubr.msk.bf16.mxu1 %vm1489_vm0, %v1488_v0  ;;  %v310_v4 = vpack.c.bf16 %v1715_v3, %v1715_v3  ;;  %v1081_v5 = vld [vmem:[%s1854_s4] ss:$0 sm:$0xff]  ;;  %s1493_s10 = smov 112   ;;  %s1494_s28 = smov 64   ;;  %vm647_vm3 = vcmask 1043456   ;;  %vm851_vm4 = vcmask 130048  }
  0x7d   : > { %1127 = vmatpush3.bf16.msra.mxu0 %v1274_v1  ;;  %v1085_v23 = vld [vmem:[%s264_s30] ss:$0 sm:$0xff]  ;;  %s1495_s13 = smov 8   ;;  %s1496_s12 = smov 16   ;;  %vm854_vm5 = vcmask 195584  }
  0x7e   : > { %1128 = vmatprep.subr.bf16.mxu0 %v1488_v0  ;;  %s1497_s14 = smov 24   ;;  %s1101_s24 = sshll.u32 %s1550_s22, 7 }
  0x7f   : > { %s302_s16 = scalar_lea.vmem [#allocation10], %s1077_s29  ;;  %p1877_p7 = scmp.ne.s32.totalorder %s1868_s23, 0 }
  0x81   : > { %1129 = vmatpush3.bf16.msra.mxu0 %v1275_v2 }
  0x82   : > { %1140 = vmatprep.subr.bf16.mxu0 %v1488_v0 }
  0x84   : > { %1131 = vmatmul.mubr.msk.bf16.vlgmr.msra.gmra.mxu0 %vm331_vm1, %v310_v4 }
  0x85   : > { %1142 = vmatprep.mubr.msk.bf16.mxu0 %vm1489_vm0, %v1488_v0 }
 0x144   : > { %v369_v6 = vpop.f32.mrf.mxu0 }
 0x145   : > { %v370_v7 = vadd.f32 %v1081_v5, %v369_v6 }
 0x146   : > { %v1132_v8 = vpop.f32.mrf.mxu0 }
 0x147   : > { %v1727_v9 = vpack.c.bf16 %v370_v7, %v370_v7 }
 0x148   : > { %v372_v10 = vpop.f32.mrf.mxu0 }
 0x149   : > { %381 = vrot.lane.b32.xlu1 %v1727_v9, %s1490_s7  ;;  %377 = vrot.lane.b32.xlu0 %v1727_v9, %s1491_s17  ;;  %s959_s7 = sshll.u32 %s302_s16, 4  ;;  %s960_s7 = int_to_ptr.vmem [resolvable:$true] %s959_s7 }
 0x14a   : > { %v1133_v11 = vpop.f32.mrf.mxu0 }
 0x14d   : > { %389 = vrot.lane.b32.xlu1 %v1727_v9, %s1492_s8  ;;  %379 = vrot.lane.b32.xlu0 %v1727_v9, %s1493_s10  ;;  %s957_s10 = scalar_lea.hbm %s1855_s5, %s1101_s24 }
 0x1bb   : > { %v1733_v12 = vpop.permute.xlu1 %381  ;;  %v1735_v13 = vpop.permute.xlu0 %377 }
 0x1bc   : > { %438 = vrot.lane.b32.xlu0 %v1735_v13, %s1492_s8 }
 0x1bf   : > { %v390_v14 = vpop.permute.xlu1 %389  ;;  %v1738_v15 = vpop.permute.xlu0 %379 }
 0x1c0   : > { %534 = vrot.lane.b32.xlu0 %v1733_v12, %s1492_s8  ;;  %486 = vrot.lane.b32.xlu1 %v1738_v15, %s1492_s8  ;;  %v396_v16 = vsel %vm391_vm2, %v390_v14, 0 }
 0x1c1   : > { %1135 = vmatpush3.bf16.xpose.msra.mxu1 %v396_v16 }
 0x1c2   : > { %1146 = vmatprep.subr.bf16.mxu1 %v1488_v0 }
 0x1c8   : > { %1137 = vmatmul.mubr.msk.bf16.vlgmr.msra.gmra.mxu1 %vm391_vm2, %v1727_v9 }
 0x1c9   : > { %1148 = vmatprep.mubr.msk.bf16.mxu1 %vm1489_vm0, %v1488_v0 }
 0x22e   : > { %v439_v17 = vpop.permute.xlu0 %438 }
 0x22f   : > { %v444_v18 = vsel %vm391_vm2, %v439_v17, 0 }
 0x230   : > { %1141 = vmatpush3.bf16.xpose.msra.mxu0 %v444_v18 }
 0x231   : > { %1152 = vmatprep.subr.bf16.mxu0 %v1488_v0 }
 0x232   : > { %v487_v19 = vpop.permute.xlu1 %486  ;;  %v535_v21 = vpop.permute.xlu0 %534 }
 0x233   : > { %v492_v20 = vsel %vm391_vm2, %v487_v19, 0  ;;  %v540_v22 = vsel %vm391_vm2, %v535_v21, 0 }
 0x234   : > { %1147 = vmatpush3.bf16.xpose.msra.mxu1 %v492_v20 }
 0x235   : > { %1158 = vmatprep.subr.bf16.mxu1 %v1488_v0 }
 0x237   : > { %1143 = vmatmul.mubr.msk.bf16.vlgmr.msra.gmra.mxu0 %vm391_vm2, %v1735_v13 }
 0x238   : > { %1153 = vmatpush3.bf16.xpose.msra.mxu0 %v540_v22  ;;  %1154 = vmatprep.mubr.msk.bf16.mxu0 %vm1489_vm0, %v1488_v0 }
 0x239   : > { %1164 = vmatprep.subr.bf16.mxu0 %v1488_v0 }
 0x23b   : > { %1149 = vmatmul.mubr.msk.bf16.vlgmr.msra.gmra.mxu1 %vm391_vm2, %v1738_v15 }
 0x23c   : > { %1160 = vmatprep.mubr.msk.bf16.mxu1 %vm1489_vm0, %v1488_v0 }
 0x23f   : > { %1155 = vmatmul.mubr.msk.bf16.vlgmr.msra.gmra.mxu0 %vm391_vm2, %v1733_v12 }
 0x240   : > { %1166 = vmatprep.mubr.msk.bf16.mxu0 %vm1489_vm0, %v1488_v0 }
 0x288   : > { %v432_v24 = vpop.f32.mrf.mxu1 }
 0x289   : > { %v433_v25 = vadd.f32 %v1085_v23, %v432_v24 }
 0x28a   : > { %v1138_v26 = vpop.f32.mrf.mxu1 }
 0x28b   : > { %v582_v27 = vsel %vm391_vm2, %v433_v25, -inf }
 0x28c   : > { %v435_v28 = vpop.f32.mrf.mxu1  ;;  %583 = vmax.xlane.f32.xlu1 %v582_v27 }
 0x28e   : > { %v1139_v29 = vpop.f32.mrf.mxu1 }
 0x2f7   : > { %v480_v30 = vpop.f32.mrf.mxu0 }
 0x2f8   : > { %v481_v31 = vadd.f32 %v1085_v23, %v480_v30 }
 0x2f9   : > { %v1144_v32 = vpop.f32.mrf.mxu0 }
 0x2fa   : > { %v585_v33 = vsel %vm391_vm2, %v481_v31, -inf }
 0x2fb   : > { %v528_v34 = vpop.f32.mrf.mxu1  ;;  %586 = vmax.xlane.f32.xlu0 %v585_v33  ;;  %v483_v35 = vpop.f32.mrf.mxu0 }
 0x2fc   : > { %v529_v36 = vadd.f32 %v1085_v23, %v528_v34 }
 0x2fd   : > { %v1145_v37 = vpop.f32.mrf.mxu0  ;;  %v1150_v38 = vpop.f32.mrf.mxu1 }
 0x2fe   : > { %v588_v39 = vsel %vm391_vm2, %v529_v36, -inf }
 0x2ff   : > { %v531_v40 = vpop.f32.mrf.mxu1  ;;  %589 = vmax.xlane.f32.xlu0 %v588_v39  ;;  %v576_v41 = vpop.f32.mrf.mxu0 }
 0x300   : > { %v577_v42 = vadd.f32 %v1085_v23, %v576_v41 }
 0x301   : > { %v1151_v43 = vpop.f32.mrf.mxu1  ;;  %v1156_v44 = vpop.f32.mrf.mxu0 }
 0x302   : > { %v591_v45 = vsel %vm391_vm2, %v577_v42, -inf }
 0x303   : > { %592 = vmax.xlane.f32.xlu1 %v591_v45  ;;  %v579_v46 = vpop.f32.mrf.mxu0 }
 0x305   : > { %v1157_v47 = vpop.f32.mrf.mxu0 }
 0x315   : > { %v584_v48 = vpop.xlane.xlu1 %583 }
 0x316   : > { %v594_v49 = vsub.f32 %v433_v25, %v584_v48 }
 0x318   : > { %v598_v50 = vmul.f32 1.442695, %v594_v49 }
 0x31a   : > { %1278 = vpow2.f32 %v598_v50 }
 0x327   : > { %v1279_v51 = vpop.eup %1278 }
 0x328   : > { %v606_v52 = vsel %vm391_vm2, %v1279_v51, 0.0 }
 0x329   : > { %607 = vadd.xlane.f32.xlu0 %v606_v52  ;;  %v1277_v52 = vld [vmem:[#allocation8] sm:$0xff]  }
 0x384   : > { %v587_v53 = vpop.xlane.xlu0 %586 }
 0x385   : > { %v595_v54 = vsub.f32 %v481_v31, %v587_v53 }
 0x387   : > { %v600_v55 = vmul.f32 1.442695, %v595_v54 }
 0x388   : > { %v590_v56 = vpop.xlane.xlu0 %589 }
 0x389   : > { %1280 = vpow2.f32 %v600_v55  ;;  %v596_v57 = vsub.f32 %v529_v36, %v590_v56 }
 0x38b   : > { %v602_v58 = vmul.f32 1.442695, %v596_v57 }
 0x38c   : > { %v593_v63 = vpop.xlane.xlu1 %592 }
 0x38d   : > { %1282 = vpow2.f32 %v602_v58  ;;  %v597_v1 = vsub.f32 %v577_v42, %v593_v63 }
 0x38f   : > { %v604_v2 = vmul.f32 1.442695, %v597_v1 }
 0x391   : > { %1284 = vpow2.f32 %v604_v2 }
 0x396   : > { %v1281_v59 = vpop.eup %1280 }
 0x397   : > { %v609_v60 = vsel %vm391_vm2, %v1281_v59, 0.0 }
 0x398   : > { %610 = vadd.xlane.f32.xlu1 %v609_v60 }
 0x39a   : > { %v1283_v61 = vpop.eup %1282 }
 0x39b   : > { %v612_v62 = vsel %vm391_vm2, %v1283_v61, 0.0 }
 0x39c   : > { %613 = vadd.xlane.f32.xlu0 %v612_v62 }
 0x39e   : > { %v1285_v4 = vpop.eup %1284 }
 0x39f   : > { %v615_v5 = vsel %vm391_vm2, %v1285_v4, 0.0 }
 0x3a9   : > { %691 = vrot.lane.b32.xlu1 %v1735_v13, %s1494_s28 }
 0x3b2   : > { %642 = vrot.lane.b32.xlu0 %v1727_v9, %s1494_s28  ;;  %v608_v6 = vpop.xlane.xlu0 %607 }
 0x3b3   : > { %1286 = vrcp.f32 %v608_v6 }
 0x3b6   : > { %787 = vrot.lane.b32.xlu0 %v1733_v12, %s1494_s28 }
 0x3c0   : > { %v1287_v7 = vpop.eup %1286 }
 0x3c1   : > { %v622_v8 = vmul.f32 %v1287_v7, %v608_v6 }
 0x3c3   : > { %v626_v10 = vsub.f32 2.0, %v622_v8 }
 0x3c5   : > { %v630_v9 = vmul.f32 %v1287_v7, %v626_v10  ;;  %v1094_v7 = vld [vmem:[%s1854_s4 + $0x1] ss:$0 sm:$0xff] }
 0x3c7   : > { %v634_v16 = vmul.f32 %v1279_v51, %v630_v9  ;;  %v1276_v51 = vld [vmem:[#allocation8 + $0x8] sm:$0xff]  }
 0x3c9   : > { %v638_v18 = vpack.c.bf16 %v634_v16, %v634_v16 }
 0x3cd   : > { %616 = vadd.xlane.f32.xlu1 %v615_v5 }
 0x3de   : > { %739 = vrot.lane.b32.xlu1 %v1738_v15, %s1494_s28  ;;  %s946_s28 = scalar_lea.sflag [#allocation4], %s1685_s2 }
 0x421   : > { %v611_v11 = vpop.xlane.xlu1 %610 }
 0x422   : > { %1288 = vrcp.f32 %v611_v11 }
 0x425   : > { %v614_v13 = vpop.xlane.xlu0 %613  ;;  %v692_v14 = vpop.permute.xlu1 %691 }
 0x426   : > { %v697_v12 = vsel %vm647_vm3, %v692_v14, 0  ;;  %1290 = vrcp.f32 %v614_v13 }
 0x427   : > { %1165 = vmatpush3.bf16.msra.mxu0 %v697_v12 }
 0x428   : > { %1176 = vmatprep.subr.bf16.mxu0 %v1488_v0 }
 0x429   : > { %v643_v17 = vpop.permute.xlu0 %642 }
 0x42a   : > { %v649_v15 = vsel %vm647_vm3, %v643_v17, 0 }
 0x42b   : > { %1159 = vmatpush3.bf16.msra.mxu1 %v649_v15 }
 0x42c   : > { %1170 = vmatprep.subr.bf16.mxu1 %v1488_v0 }
 0x42d   : > { %v788_v24 = vpop.permute.xlu0 %787 }
 0x42e   : > { %1161 = vmatmul.mubr.msk.bf16.vlgmr.msra.gmra.mxu1 %vm391_vm2, %v638_v18  ;;  %v793_v26 = vsel %vm647_vm3, %v788_v24, 0 }
 0x42f   : > { %v1289_v19 = vpop.eup %1288  ;;  %1172 = vmatprep.mubr.msk.bf16.mxu1 %vm1489_vm0, %v1488_v0 }
 0x430   : > { %v623_v20 = vmul.f32 %v1289_v19, %v611_v11 }
 0x432   : > { %v627_v21 = vsub.f32 2.0, %v623_v20 }
 0x433   : > { %v1291_v27 = vpop.eup %1290 }
 0x434   : > { %v631_v22 = vmul.f32 %v1289_v19, %v627_v21  ;;  %v624_v28 = vmul.f32 %v1291_v27, %v614_v13 }
 0x436   : > { %v635_v23 = vmul.f32 %v1281_v59, %v631_v22  ;;  %v628_v29 = vsub.f32 2.0, %v624_v28 }
 0x438   : > { %v639_v25 = vpack.c.bf16 %v635_v23, %v635_v23  ;;  %v632_v30 = vmul.f32 %v1291_v27, %v628_v29  ;;  %v1098_v23 = vld [vmem:[%s1854_s4 + $0x2] ss:$0 sm:$0xff] }
 0x43a   : > { %1167 = vmatmul.mubr.msk.bf16.vlgmr.msra.gmra.mxu0 %vm391_vm2, %v639_v25  ;;  %v636_v32 = vmul.f32 %v1283_v61, %v632_v30  ;;  %v1099_v25 = vld [vmem:[%s1854_s4 + $0x3] ss:$0 sm:$0xff] }
 0x43b   : > { %1177 = vmatpush3.bf16.msra.mxu0 %v793_v26  ;;  %1178 = vmatprep.mubr.msk.bf16.mxu0 %vm1489_vm0, %v1488_v0 }
 0x43c   : > { %v640_v35 = vpack.c.bf16 %v636_v32, %v636_v32 }
 0x456   : > { %v617_v31 = vpop.xlane.xlu1 %616 }
 0x457   : > { %1292 = vrcp.f32 %v617_v31 }
 0x45a   : > { %v740_v33 = vpop.permute.xlu1 %739 }
 0x45b   : > { %v745_v34 = vsel %vm647_vm3, %v740_v33, 0 }
 0x45c   : > { %1171 = vmatpush3.bf16.msra.mxu1 %v745_v34 }
 0x45d   : > { %1182 = vmatprep.subr.bf16.mxu1 %v1488_v0 }
 0x45f   : > { %1173 = vmatmul.mubr.msk.bf16.vlgmr.msra.gmra.mxu1 %vm391_vm2, %v640_v35 }
 0x460   : > { %1186 = vmatprep.mubr.msk.bf16.mxu1 %vm1489_vm0, %v1488_v0  ;;  %1183 = vmatpush3.bf16.msra.mxu1 %v1276_v51 }
 0x461   : > { %1184 = vmatprep.subr.bf16.mxu1 %v1488_v0 }
 0x464   : > { %v1293_v36 = vpop.eup %1292  ;;  %1185 = vmatpush3.bf16.msra.mxu1 %v1277_v52 }
 0x465   : > { %v625_v37 = vmul.f32 %v1293_v36, %v617_v31 }
 0x467   : > { %v629_v38 = vsub.f32 2.0, %v625_v37 }
 0x469   : > { %v633_v39 = vmul.f32 %v1293_v36, %v629_v38 }
 0x46b   : > { %v637_v40 = vmul.f32 %v1285_v4, %v633_v39 }
 0x46d   : > { %v641_v41 = vpack.c.bf16 %v637_v40, %v637_v40 }
 0x46f   : > { %1179 = vmatmul.mubr.msk.bf16.vlgmr.msra.gmra.mxu0 %vm391_vm2, %v641_v41 }
 0x4ee   : > { %v685_v42 = vpop.f32.mrf.mxu1 }
 0x4ef   : > { %v835_v1 = vpack.c.bf16 %v685_v42, %v685_v42 }
 0x4f0   : > { %v1162_v43 = vpop.f32.mrf.mxu1 }
 0x4f2   : > { %v688_v44 = vpop.f32.mrf.mxu1 }
 0x4f4   : > { %v1163_v45 = vpop.f32.mrf.mxu1 }
 0x4fa   : > { %v733_v46 = vpop.f32.mrf.mxu0 }
 0x4fb   : > { %v836_v47 = vpack.c.bf16 %v733_v46, %v733_v46 }
 0x4fc   : > { %v1168_v48 = vpop.f32.mrf.mxu0 }
 0x4fd   : > { %840 = vrot.lane.b32.xlu1 %v836_v47, %s1495_s13  ;;  %s1404_s13 = scalar_lea.vmem %s960_s7, 128 }
 0x4fe   : > { %v736_v49 = vpop.f32.mrf.mxu0  ;;  %p1405_p12 = scmp.ne.s32.totalorder %s960_s7, %s1404_s13 }
 0x500   : > { %v1169_v50 = vpop.f32.mrf.mxu0  ;;  %p1406_p9 = pnand %p1405_p12, %p1877_p7 }
 0x502   : > { %p1407_p13 = pneg %p1406_p9 }
 0x51f   : > { %v781_v53 = vpop.f32.mrf.mxu1 }
 0x520   : > { %v837_v54 = vpack.c.bf16 %v781_v53, %v781_v53 }
 0x521   : > { %v1174_v55 = vpop.f32.mrf.mxu1 }
 0x522   : > { %843 = vrot.lane.b32.xlu0 %v837_v54, %s1496_s12  ;;  %s1498_s12 = smov [#allocation10]  }
 0x523   : > { %v784_v56 = vpop.f32.mrf.mxu1  ;;  %s1408_s22 = sshll.u32 %s1498_s12, 4  ;;  %s1409_s22 = int_to_ptr.vmem [resolvable:$false] %s1408_s22 }
 0x524   : > { %s1410_s29 = scalar_lea.vmem %s1409_s22, 256  ;;  %p1411_p5 = scmp.lt.s32.totalorder %s960_s7, %s1409_s22 }
 0x525   : > { %v1175_v57 = vpop.f32.mrf.mxu1  ;;  %p1412_p1 = scmp.lt.s32.totalorder %s1410_s29, %s1404_s13 }
 0x527   : > { %p1413_p4 = por %p1412_p1, %p1411_p5 }
 0x529   : > { %p1414_p3 = pnand %p1413_p4, %p1407_p13 }
 0x52f   : > { %v829_v58 = vpop.f32.mrf.mxu0 }
 0x530   : > { %v838_v59 = vpack.c.bf16 %v829_v58, %v829_v58 }
 0x531   : > { %v1180_v60 = vpop.f32.mrf.mxu0 }
 0x532   : > { %846 = vrot.lane.b32.xlu1 %v838_v59, %s1497_s14 }
 0x533   : > { %v832_v61 = vpop.f32.mrf.mxu0 }
 0x535   : > { %v1181_v62 = vpop.f32.mrf.mxu0 }
 0x56f   : > { %v841_v63 = vpop.permute.xlu1 %840 }
 0x570   : > { %v850_v0 = vsel %vm391_vm2, %v835_v1, %v841_v63 }
 0x594   : > { %v844_v2 = vpop.permute.xlu0 %843 }
 0x595   : > { %v853_v4 = vsel %vm851_vm4, %v850_v0, %v844_v2 }
 0x5a4   : > { %v847_v5 = vpop.permute.xlu1 %846 }
 0x5a5   : > { %v856_v6 = vsel %vm854_vm5, %v853_v4, %v847_v5 }
 0x5a6   : > { %1187 = vmatmul.mubr.msk.bf16.vlgmr.msra.gmra.mxu1 %vm331_vm1, %v856_v6 }
 0x666   : > { %v913_v8 = vpop.f32.mrf.mxu1 }
 0x667   : > { %v914_v10 = vadd.f32 %v1094_v7, %v913_v8 }
 0x668   : > { %v1188_v11 = vpop.f32.mrf.mxu1 }
 0x669   : > { %v919_v9 = vadd.f32 %v914_v10, %v1715_v3 }
 0x66a   : > { %v916_v13 = vpop.f32.mrf.mxu1 }
 0x66b   : > { %v920_v14 = vsel %vm331_vm1, %v919_v9, 0.0 }
 0x66c   : > { %921 = vadd.xlane.f32.xlu0 %v920_v14  ;;  %v1189_v12 = vpop.f32.mrf.mxu1 }
 0x6f5   : > { %v922_v16 = vpop.xlane.xlu0 %921 }
 0x6f6   : > { %v924_v17 = vmul.f32 0.03125, %v922_v16 }
 0x6f8   : > { %v925_v15 = vsub.f32 %v919_v9, %v924_v17 }
 0x6fa   : > { %v926_v18 = vmul.f32 %v925_v15, %v925_v15 }
 0x6fc   : > { %v927_v19 = vsel %vm331_vm1, %v926_v18, 0.0 }
 0x6fd   : > { %928 = vadd.xlane.f32.xlu1 %v927_v19 }
 0x786   : > { %v929_v20 = vpop.xlane.xlu1 %928 }
 0x787   : > { %v930_v21 = vmul.f32 0.03125, %v929_v20 }
 0x789   : > { %v931_v22 = vadd.f32 1e-12, %v930_v21 }
 0x78b   : > { %1294 = vrsqrt.f32 %v931_v22 }
 0x798   : > { %v1295_v3 = vpop.eup %1294 }
 0x799   : > { %v933_v24 = vmul.f32 %v1295_v3, %v925_v15 }
 0x79b   : > { %v938_v26 = vmul.f32 %v1098_v23, %v933_v24 }
 0x79d   : > { %v943_v27 = vadd.f32 %v1099_v25, %v938_v26 }
 0x79f   : > { %944 = vst.msk [vmem:[%s302_s16] sm:$0xff] %vm331_vm1, %v943_v27 }
 0x7a0   : > { %1417 = shalt.err (!%p1414_p3)
}
 0x7a1   : > { %s1418_s14 = scalar_lea.hbm %s957_s10, 128  ;;  %s1422_s6 = scalar_lea.hbm %s1855_s5, 256 }
 0x7a2   : > { %p1419_p10 = scmp.ne.s32.totalorder %s957_s10, %s1418_s14  ;;  %p1423_p11 = scmp.lt.s32.totalorder %s957_s10, %s1855_s5 }
 0x7a3   : > { %p1424_p2 = scmp.lt.s32.totalorder %s1422_s6, %s1418_s14 }
 0x7a4   : > { %p1420_p0 = pnand %p1419_p10, %p1877_p7 }
 0x7a5   : > { %p1425_p6 = por %p1424_p2, %p1423_p11 }
 0x7a6   : > { %p1421_p8 = pneg %p1420_p0 }
 0x7a8   : > { %p1426_p12 = pnand %p1425_p6, %p1421_p8 }
 0x7aa   : > { %1429 = shalt.err (!%p1426_p12)
}
 0x7ab   : > { %1202 = dma.vmem_to_hbm [thread:$0]  (%p1877_p7), %s960_s7, 128, %s957_s10, %s946_s28  }
 0x7ac PF: > { %s971_s11 = sand.u32 1, %s1468_s18   ;;  %p1878_p9 = scmp.ne.s32.totalorder %s1863_s25, 0 }
 0x7ad   : > { %p1879_p13 = scmp.ge.s32.totalorder %s1480_s21, 2  ;;  %s972_s30 = scalar_lea.sflag [#allocation4], %s971_s11 }
 0x7af   : > { %p1219_p5 = pnand %p1879_p13, %p1878_p9 }
 0x7b1   : > { %p1220_p1 = pneg %p1219_p5 }
 0x7b3   : > { %1463 = dma.done.wait (%p1220_p1), %s972_s30, 128  }
 0x7b4   : > { %1465 = vsyncadd (%p1220_p1), %s972_s30, 4294967168  ;;  %p22_p4 = scmp.ge.s32.totalorder %s1601_s15, 4   ;;  %s1880_s18 = smov %s1472_s19 }
 0x7b5   : > { %s1881_s19 = smov %s1476_s20  ;;  %s1882_s20 = smov %s1617_s27 }
 0x7b6   : > { %s1883_s21 = smov %s1601_s15  ;;  %24 = sbr.rel (!%p22_p4) target bundleno = 11 (0xb), region = 106 }
 0x7bb   :  { %977 = vsyncpa [#allocation3], 1 }
 0x7bc   :  { %979 = vsyncpa [#allocation3 + $0x1], 1 }
 0x7bd   :  { %980 = vsyncpa [#allocation6], 1 }
 0x7be   :  { %982 = vsyncpa [#allocation6 + $0x1], 1 }
 0x7bf   :  { %983 = vsyncpa [#allocation9], 1 }
 0x7c0   :  { %984 = vsyncpa [#allocation4], 1 }
 0x7c1   :  { %986 = vsyncpa [#allocation4 + $0x1], 1 }

</bundles_post_ra>
